<compile_context>
chip_gen: v7x
topology: tpu7x:2x2x1
jax: 0.10.0
libtpu: 0.0.40
codegen_flags: <defaults>
</compile_context>

<pallas_src>
import jax
import jax.numpy as jnp
from jax.experimental import pallas as pl
from jax.experimental.pallas import tpu as pltpu


def _fused_deconv_tanh_kernel(w0_ref, w1_ref, b1_ref, x_ref, o_ref):
    # Scalars live in SMEM; fold the two 1x1 transposed-conv weights on the
    # scalar unit once per grid step (not per element).  Per element this
    # leaves 1 vmul + 1 vadd (VPU) + tanh (EUP): HBM-bandwidth-bound on all
    # of v5e / v6e / v7x.
    s = w0_ref[0] * w1_ref[0]
    b = b1_ref[0]
    # TODO(synk): on v7x, check the bundle dump for how jnp.tanh lowers; if it
    # is a long VALU polynomial (not an EUP push), switch to an exp-based tanh.
    o_ref[...] = jnp.tanh(x_ref[...] * s + b)


_LANE_CANDIDATES = (1024, 512, 256, 128)
_MIN_PALLAS_BYTES = 256 * 1024          # below this, XLA's fused elementwise wins
_TARGET_BLOCK_BYTES = 2 * 1024 * 1024   # ~2 MiB tiles: ~86% of HBM roofline


def _round_up(v, m):
    return ((v + m - 1) // m) * m


def _choose_layout(total):
    """Pick (lanes, rows): lanes a multiple of 128, preferring a pad-free split."""
    for lanes in _LANE_CANDIDATES:
        if total % lanes == 0:
            return lanes, total // lanes
    lanes = 512
    return lanes, -(-total // lanes)    # padding will be required


def _choose_block_rows(rows, lanes, itemsize):
    """8-aligned block_rows, ~2 MiB tiles, pad-free and even tile count when possible."""
    target_rows = max(8, (_TARGET_BLOCK_BYTES // (lanes * itemsize)) // 8 * 8)
    if rows <= target_rows:
        # Whole slab fits in one target-size tile.  If it splits cleanly into
        # two 8-aligned halves, prefer 2 tiles so both v7x TensorCores pull
        # HBM bandwidth; otherwise a single full-array block (exempt from the
        # (8,128) divisibility rule).
        if rows >= 16 and rows % 16 == 0:
            return rows // 2
        return rows
    # Largest 8-multiple divisor of rows <= target_rows, preferring an even
    # tile count (v7x megacore balance); keeps rows_padded == rows (no pad).
    divisors = [br for br in range(8, target_rows + 1, 8) if rows % br == 0]
    if divisors:
        even = [br for br in divisors if (rows // br) % 2 == 0]
        return max(even) if even else max(divisors)
    # No clean divisor: accept row padding with a target-size block.
    return target_rows


def _plain_forward(x, w0, w1, b1):
    # Same op order as the torch module (conv0 scale, conv1 scale+bias, tanh).
    return jnp.tanh((x * w0[0]) * w1[0] + b1[0])


def model_forward(x_nchw, w0, w1, b1, *, force_pallas=False):
    """Forward of the torch Model. x_nchw: (N,1,H,W) f32; w0,w1,b1: shape-(1,) f32."""
    n, c, h, w = x_nchw.shape
    assert c == 1, "module has in_channels = out_channels = 1"

    orig_shape = x_nchw.shape
    total = int(x_nchw.size)
    itemsize = x_nchw.dtype.itemsize

    # Tiny inputs: launch + per-step overhead dominates; let XLA fuse it.
    if total * itemsize < _MIN_PALLAS_BYTES and not force_pallas:
        return _plain_forward(x_nchw, w0, w1, b1)

    lanes, rows = _choose_layout(total)
    block_rows = _choose_block_rows(rows, lanes, itemsize)
    rows_padded = _round_up(rows, block_rows)
    padded_total = rows_padded * lanes
    num_tiles = rows_padded // block_rows

    # Lane-dense (rows, lanes) slab.  Padding (an extra full HBM round trip)
    # only happens when the element count truly doesn't factor cleanly.
    flat = x_nchw.reshape(-1)
    if padded_total != total:
        flat = jnp.pad(flat, (0, padded_total - total))
    x2d = flat.reshape(rows_padded, lanes)

    out2d = pl.pallas_call(
        _fused_deconv_tanh_kernel,
        out_shape=jax.ShapeDtypeStruct(x2d.shape, x2d.dtype),
        grid=(num_tiles,),
        in_specs=[
            pl.BlockSpec(memory_space=pltpu.MemorySpace.SMEM),     # w0
            pl.BlockSpec(memory_space=pltpu.MemorySpace.SMEM),     # w1
            pl.BlockSpec(memory_space=pltpu.MemorySpace.SMEM),     # b1
            pl.BlockSpec((block_rows, lanes), lambda i: (i, 0)),   # x tile
        ],
        out_specs=pl.BlockSpec((block_rows, lanes), lambda i: (i, 0)),
        input_output_aliases={3: 0},   # output reuses the kernel-local x2d slab
        cost_estimate=pl.CostEstimate(
            flops=2 * padded_total,
            transcendentals=padded_total,
            bytes_accessed=2 * padded_total * itemsize,
        ),
        compiler_params=pltpu.CompilerParams(
            dimension_semantics=("parallel",),  # independent tiles -> megacore shard
        ),
    )(w0, w1, b1, x2d)

    if padded_total != total:
        return out2d.reshape(-1)[:total].reshape(orig_shape)
    return out2d.reshape(orig_shape)


if __name__ == "__main__":
    key = jax.random.PRNGKey(0)
    kx1, kx2, kx3, kx4, k0, k1, kb = jax.random.split(key, 7)

    # ConvTranspose2d(1,1,1) weights/bias are scalars.
    w0 = jax.random.uniform(k0, (1,), minval=-1.0, maxval=1.0, dtype=jnp.float32)
    w1 = jax.random.uniform(k1, (1,), minval=-1.0, maxval=1.0, dtype=jnp.float32)
    b1 = jax.random.uniform(kb, (1,), minval=-1.0, maxval=1.0, dtype=jnp.float32)

    def ref_fn(x):
        # Plain-JAX reference with the torch module's op order.
        return jnp.tanh((x * w0[0]) * w1[0] + b1[0])

    # Case 1: small module-spec shape; force the Pallas path so the kernel runs
    # (the auto-router would pick plain XLA at this size).
    x1 = jax.random.normal(kx1, (2, 1, 16, 16), dtype=jnp.float32)
    o1 = model_forward(x1, w0, w1, b1, force_pallas=True)
    jax.block_until_ready(o1)
    assert o1.shape == x1.shape
    assert jnp.allclose(o1, ref_fn(x1), atol=1e-6), "mismatch (small, pallas)"

    # Case 2: 640 KiB input -> auto Pallas, pad-free layout, 2 even tiles.
    x2 = jax.random.normal(kx2, (2, 1, 128, 640), dtype=jnp.float32)
    o2 = model_forward(x2, w0, w1, b1)
    jax.block_until_ready(o2)
    assert jnp.allclose(o2, ref_fn(x2), atol=1e-6), "mismatch (mid)"

    # Case 3: 4 MiB input -> two 2 MiB (512,1024) tiles, no padding.
    x3 = jax.random.normal(kx3, (4, 1, 512, 512), dtype=jnp.float32)
    o3 = model_forward(x3, w0, w1, b1)
    jax.block_until_ready(o3)
    assert jnp.allclose(o3, ref_fn(x3), atol=1e-6), "mismatch (big)"

    # Case 4: awkward width (not a multiple of 128) -> exercises the padded
    # fallback path; forced through Pallas.
    x4 = jax.random.normal(kx4, (2, 1, 16, 15), dtype=jnp.float32)
    o4 = model_forward(x4, w0, w1, b1, force_pallas=True)
    jax.block_until_ready(o4)
    assert jnp.allclose(o4, ref_fn(x4), atol=1e-6), "mismatch (padded)"

    # Tiny-input auto-router sanity (plain fused XLA path).
    o1_auto = model_forward(x1, w0, w1, b1)
    jax.block_until_ready(o1_auto)
    assert jnp.allclose(o1_auto, ref_fn(x1), atol=1e-6), "mismatch (tiny fallback)"

    print("KERNEL_OK")
</pallas_src>

<mosaic_0001>
module attributes {stable_mosaic.version = 11 : i64} {
  func.func @_fused_deconv_tanh_kernel(%arg0: i32, %arg1: memref<1xf32, #tpu.memory_space<smem>>, %arg2: memref<1xf32, #tpu.memory_space<smem>>, %arg3: memref<1xf32, #tpu.memory_space<smem>>, %arg4: memref<1x512xf32, #tpu.memory_space<vmem>>, %arg5: memref<1x512xf32, #tpu.memory_space<vmem>>) attributes {dimension_semantics = [#tpu.dimension_semantics<parallel>], iteration_bounds = array<i64: 1>, scalar_prefetch = 0 : i64, scratch_operands = 0 : i64, tpu.core_type = #tpu.core_type<tc>, window_params = [{transform_indices = @transform_0, window_bounds = array<i64: 1>}, {transform_indices = @transform_1, window_bounds = array<i64: 1>}, {transform_indices = @transform_2, window_bounds = array<i64: 1>}, {transform_indices = @transform_3, window_bounds = array<i64: 1, 512>}, {transform_indices = @transform_4, window_bounds = array<i64: 1, 512>}]} {
    %c0 = arith.constant 0 : index
    %0 = memref.load %arg1[%c0] : memref<1xf32, #tpu.memory_space<smem>>
    %c0_0 = arith.constant 0 : index
    %1 = memref.load %arg2[%c0_0] : memref<1xf32, #tpu.memory_space<smem>>
    %2 = arith.mulf %0, %1 : f32
    %c0_1 = arith.constant 0 : index
    %3 = memref.load %arg3[%c0_1] : memref<1xf32, #tpu.memory_space<smem>>
    %c0_2 = arith.constant 0 : index
    %c0_3 = arith.constant 0 : index
    %4 = vector.load %arg4[%c0_2, %c0_3] : memref<1x512xf32, #tpu.memory_space<vmem>>, vector<1x512xf32>
    %5 = vector.broadcast %2 : f32 to vector<1x512xf32>
    %6 = arith.mulf %4, %5 : vector<1x512xf32>
    %7 = vector.broadcast %3 : f32 to vector<1x512xf32>
    %8 = arith.addf %6, %7 : vector<1x512xf32>
    %9 = math.tanh %8 : vector<1x512xf32>
    %c0_4 = arith.constant 0 : index
    %c0_5 = arith.constant 0 : index
    %10 = vector.load %arg5[%c0_4, %c0_5] : memref<1x512xf32, #tpu.memory_space<vmem>>, vector<1x512xf32>
    tpu.vector_store %arg5[%c0_4, %c0_5], %9 {strides = array<i32>} : memref<1x512xf32, #tpu.memory_space<vmem>>, vector<1x512xf32>,
    return
  }
  func.func @transform_0(%arg0: i32) -> i32 {
    %c0_i32 = arith.constant 0 : i32
    %c0_i32_0 = arith.constant 0 : i32
    return %c0_i32 : i32
  }
  func.func @transform_1(%arg0: i32) -> i32 {
    %c0_i32 = arith.constant 0 : i32
    %c0_i32_0 = arith.constant 0 : i32
    return %c0_i32 : i32
  }
  func.func @transform_2(%arg0: i32) -> i32 {
    %c0_i32 = arith.constant 0 : i32
    %c0_i32_0 = arith.constant 0 : i32
    return %c0_i32 : i32
  }
  func.func @transform_3(%arg0: i32) -> (i32, i32) {
    %c0_i32 = arith.constant 0 : i32
    %c0_i32_0 = arith.constant 0 : i32
    return %arg0, %c0_i32 : i32, i32
  }
  func.func @transform_4(%arg0: i32) -> (i32, i32) {
    %c0_i32 = arith.constant 0 : i32
    %c0_i32_0 = arith.constant 0 : i32
    return %arg0, %c0_i32 : i32, i32
  }
}

</mosaic_0001>

<bundles_post_ra>
// kernel: tpu_custom_call.1
= control target key start
LH: loop header
LB: loop body
LE: loop exit
PB: predicated region body
PF: predicated region fallthrough
CT: control target
= control target key end

     0   :  { %12 = vsyncpa [#allocation6], 0  ;;  %s175_s0 = inlined_call_operand.<no memory space> [shape: f32[1], index: 0, kind: input, shape index: {}]   ;;  %s176_s1 = inlined_call_operand.<no memory space> [shape: f32[1], index: 1, kind: input, shape index: {}]   ;;  %s177_s2 = inlined_call_operand.<no memory space> [shape: f32[1], index: 2, kind: input, shape index: {}]   ;;  %s178_s3 = inlined_call_operand.hbm [shape: f32[1,512], index: 3, kind: input, shape index: {}, may-alias: {3,4}]   ;;  %s179_s4 = inlined_call_operand.hbm [shape: f32[1,512], index: 4, kind: output, shape index: {}, may-alias: {3,4}]  }
   0x1   :  { %13 = vsyncpa [#allocation7], 0  ;;  %s115_s15 = smov [#allocation5]   ;;  %s67_s19 = scalar_lea.hbm %s178_s3, 64 }
   0x2   :  { %s26_s16 = sshll.u32 %s115_s15, 4  ;;  %p68_p0 = scmp.ne.s32.totalorder %s178_s3, %s67_s19  ;;  %s27_s16 = int_to_ptr.vmem [resolvable:$true] %s26_s16 }
   0x3   :  { %p71_p1 = scmp.lt.u32.totalorder %s67_s19, %s178_s3 }
   0x5   :  { %p73_p2 = pnand %p71_p1, %p68_p0 }
   0x7   :  { %76 = shalt.err (!%p73_p2)
}
   0x8   :  { %s77_s24 = scalar_lea.vmem %s27_s16, 64  ;;  %p82_p4 = scmp.lt.s32.totalorder %s27_s16, %s27_s16 }
   0x9   :  { %p78_p3 = scmp.ne.s32.totalorder %s27_s16, %s77_s24  ;;  %p83_p5 = scmp.lt.s32.totalorder %s77_s24, %s77_s24 }
   0xb   :  { %p84_p6 = por %p83_p5, %p82_p4 }
   0xd   :  { %p85_p7 = pnand %p84_p6, %p78_p3 }
   0xf   :  { %88 = shalt.err (!%p85_p7)
}
  0x10   :  { %29 = dma.hbm_to_vmem [thread:$0]  %s178_s3, 64, %s27_s16, [#allocation6]  }
  0x11   :  { %111 = dma.done.wait [#allocation6], 64  }
  0x12   :  { %112 = vsyncadd [#allocation6], 4294967232  ;;  %s35_s5 = smul.f32 %s176_s1, %s175_s0  ;;  %v37_v1 = vld [vmem:[#allocation5] sm:$0xf]  ;;  %v40_v2 = vstv %s177_s2  ;;  %v43_v5 = vlaneseq  ;;  %s116_s3 = smov [#allocation8]  }
  0x13   :  { %s54_s8 = sshll.u32 %s116_s3, 4  ;;  %s55_s8 = int_to_ptr.vmem [resolvable:$true] %s54_s8 }
  0x14   :  { %v38_v0 = vstv %s35_s5  ;;  %vm45_vm0 = vcmp.lt.s32.totalorder %v43_v5, 512  ;;  %s89_s9 = scalar_lea.vmem %s55_s8, 64  ;;  %p94_p9 = scmp.lt.s32.totalorder %s55_s8, %s55_s8 }
  0x15   :  { %v39_v3 = vmul.f32 %v38_v0, %v37_v1  ;;  %p90_p8 = scmp.ne.s32.totalorder %s55_s8, %s89_s9  ;;  %p95_p10 = scmp.lt.s32.totalorder %s89_s9, %s89_s9 }
  0x17   :  { %v41_v4 = vadd.f32 %v40_v2, %v39_v3  ;;  %p96_p11 = por %p95_p10, %p94_p9 }
  0x19   :  { %65 = vtanh.f32 %v41_v4  ;;  %p97_p12 = pnand %p96_p11, %p90_p8 }
  0x23   :  { %v66_v6 = vpop.eup %65 }
  0x24   :  { %47 = vst.msk [vmem:[#allocation8] sm:$0xf] %vm45_vm0, %v66_v6 }
  0x25   :  { %100 = shalt.err (!%p97_p12)
}
  0x26   :  { %s101_s2 = scalar_lea.hbm %s179_s4, 64 }
  0x27   :  { %p102_p13 = scmp.ne.s32.totalorder %s179_s4, %s101_s2  ;;  %p105_p0 = scmp.lt.u32.totalorder %s101_s2, %s179_s4 }
  0x29   :  { %p107_p1 = pnand %p105_p0, %p102_p13 }
  0x2b   :  { %110 = shalt.err (!%p107_p1)
}
  0x2c   :  { %57 = dma.vmem_to_hbm [thread:$0]  %s55_s8, 64, %s179_s4, [#allocation7]  }
  0x2d   :  { %113 = dma.done.wait [#allocation7], 64  }
  0x2e   :  { %114 = vsyncadd [#allocation7], 4294967232 }
  0x2f   :  { %61 = vsyncpa [#allocation6], 1 }
  0x30   :  { %62 = vsyncpa [#allocation7], 1 }

</bundles_post_ra>
